<compile_context>
chip_gen: v5e
topology: v5e:2x2
jax: 0.10.0
libtpu: 0.0.40
codegen_flags: <defaults>
</compile_context>

<pallas_src>
import jax
import jax.numpy as jnp
from jax.experimental import pallas as pl
from jax.experimental.pallas import tpu as pltpu

_LANE = 128
_MAX_ROW_BYTES = 1 << 15      # 32 KiB per slab row keeps rows lane-dense
_VMEM_LIMIT_BYTES = 48 << 20  # explicit scoped-VMEM limit; safe on v5e/v6e/v7x


def _copy_kernel(x_ref, o_ref):
    # Pure identity copy of the current tile; unsqueeze is a wrapper reshape.
    o_ref[...] = x_ref[...]


def _round_up(n, m):
    return ((n + m - 1) // m) * m


def _target_block_bytes():
    """Per-generation block-byte budget for the bandwidth-bound copy."""
    try:
        info = pltpu.get_tpu_info()
        vmem = getattr(info, "vmem_capacity_bytes", None)
        # v7x: 64 MiB VMEM/TC but ~3.2 TB/s HBM -> larger blocks to keep the
        # per-grid-step overhead (<~0.35 us) under ~10%.  8 MiB x 4 buffers
        # = 32 MiB, within the explicit 48 MiB limit below.
        if vmem is not None and vmem <= (64 << 20):
            return 8 << 20
    except Exception:
        pass
    # v5e/v6e: copy kernels plateau around 4 MiB blocks; v5e gains nothing
    # beyond that (and 4 MiB x 4 buffers needs the explicit vmem limit).
    return 4 << 20


def _plan_slab(total, itemsize, block_bytes):
    """Pick (width, tile_rows, rows_padded) for a lane-dense 2-D copy slab."""
    # Native packed sublane tile: 8 rows f32, 16 bf16/f16, 32 int8/fp8.
    sub = max(8, 32 // itemsize)

    # Widen the lane dim (power-of-two multiple of 128) up to 32 KiB per row,
    # but keep enough rows for at least one full sublane tile of real data.
    width = _LANE
    while (width * 2 * itemsize <= _MAX_ROW_BYTES) and (width * 2 * sub <= total):
        width *= 2
    rows = pl.cdiv(total, width)

    # VMEM cap: one block <= block_bytes (double-buffered in+out stays small).
    vmem_cap = max(sub, (block_bytes // (width * itemsize)) // sub * sub)

    # Ensure >=2 (ideally 4) grid steps when there are enough rows, so in/out
    # DMA overlap and the copy can shard across v7x's two TensorCores.
    if rows >= 4 * sub:
        min_steps = 4
    elif rows >= 2 * sub:
        min_steps = 2
    else:
        min_steps = 1
    if min_steps > 1:
        split_cap = max(sub, (rows // min_steps) // sub * sub)
    else:
        split_cap = _round_up(rows, sub)

    tile_rows = min(vmem_cap, split_cap)
    rows_padded = _round_up(rows, tile_rows)   # no partial last block
    return width, tile_rows, rows_padded


def unsqueeze_pallas(x, dim, *, donate=False):
    """Equivalent of torch.Tensor.unsqueeze(dim); data copy done in Pallas."""
    ndim = x.ndim
    # PyTorch semantics: valid dim range is [-(ndim+1), ndim]; negative wraps.
    if not (-(ndim + 1) <= dim <= ndim):
        raise ValueError(f"dim {dim} out of range for unsqueeze on {ndim}-d input")
    if dim < 0:
        dim = dim + ndim + 1
    out_shape = x.shape[:dim] + (1,) + x.shape[dim:]

    total = x.size
    if total == 0:
        return jnp.reshape(x, out_shape)  # nothing to copy

    itemsize = jnp.dtype(x.dtype).itemsize
    block_bytes = _target_block_bytes()
    width, tile_rows, rows_padded = _plan_slab(total, itemsize, block_bytes)
    padded_total = rows_padded * width

    flat = jnp.reshape(x, (total,))
    if padded_total != total:
        # Wrapper-side pad keeps the lane-dense, pipelined, VMEM-bounded path
        # for non-128-multiple sizes; sliced back off after the copy.
        flat = jnp.pad(flat, (0, padded_total - total))
    slab = jnp.reshape(flat, (rows_padded, width))

    grid = (rows_padded // tile_rows,)
    cost = pl.CostEstimate(
        flops=0, transcendentals=0, bytes_accessed=2 * padded_total * itemsize
    )

    # TODO(synk): consider pltpu.CORE_PARALLEL on v7x if plain "parallel"
    # doesn't shard this 1-D grid across both TensorCores in this toolchain.
    out_slab = pl.pallas_call(
        _copy_kernel,
        out_shape=jax.ShapeDtypeStruct((rows_padded, width), x.dtype),
        grid=grid,
        in_specs=[pl.BlockSpec((tile_rows, width), lambda i: (i, 0))],
        out_specs=pl.BlockSpec((tile_rows, width), lambda i: (i, 0)),
        compiler_params=pltpu.CompilerParams(
            dimension_semantics=("parallel",),
            vmem_limit_bytes=_VMEM_LIMIT_BYTES,
        ),
        cost_estimate=cost,
        # Identity copy: output may reuse the input HBM allocation when the
        # caller no longer needs x (each block is read before being rewritten).
        input_output_aliases={0: 0} if donate else {},
    )(slab)

    out_flat = jnp.reshape(out_slab, (padded_total,))
    if padded_total != total:
        out_flat = out_flat[:total]
    # The unsqueeze itself: pure metadata reshape, outside the kernel.
    return jnp.reshape(out_flat, out_shape)


if __name__ == "__main__":
    key = jax.random.PRNGKey(0)

    # NCHW input matching the PyTorch module's typical usage, dim=1.
    x = jax.random.normal(key, (2, 4, 16, 16), dtype=jnp.float32)
    out = jax.block_until_ready(unsqueeze_pallas(x, 1))
    ref = jnp.expand_dims(x, 1)
    assert out.shape == (2, 1, 4, 16, 16), out.shape
    assert out.dtype == x.dtype
    assert bool(jnp.array_equal(out, ref))

    # Exercise the padded (non-128-multiple) path and a negative dim.
    y = jax.random.normal(jax.random.PRNGKey(1), (3, 5, 7), dtype=jnp.float32)
    out_y = jax.block_until_ready(unsqueeze_pallas(y, -1))
    assert out_y.shape == (3, 5, 7, 1)
    assert bool(jnp.array_equal(out_y, jnp.expand_dims(y, -1)))

    # Exercise the sub-32-bit (bf16) sublane-tile path.
    z = jax.random.normal(jax.random.PRNGKey(2), (2, 8, 32), dtype=jnp.bfloat16)
    out_z = jax.block_until_ready(unsqueeze_pallas(z, 0))
    assert out_z.shape == (1, 2, 8, 32)
    assert bool(jnp.array_equal(out_z, jnp.expand_dims(z, 0)))

    print("KERNEL_OK")
</pallas_src>

<mosaic_0001>
module attributes {stable_mosaic.version = 11 : i64} {
  func.func @_copy_kernel(%arg0: i32, %arg1: memref<8x256xf32, #tpu.memory_space<vmem>>, %arg2: memref<8x256xf32, #tpu.memory_space<vmem>>) attributes {dimension_semantics = [#tpu.dimension_semantics<parallel>], iteration_bounds = array<i64: 1>, scalar_prefetch = 0 : i64, scratch_operands = 0 : i64, tpu.core_type = #tpu.core_type<tc>, window_params = [{transform_indices = @transform_0, window_bounds = array<i64: 8, 256>}, {transform_indices = @transform_1, window_bounds = array<i64: 8, 256>}]} {
    %c0 = arith.constant 0 : index
    %c0_0 = arith.constant 0 : index
    %0 = vector.load %arg1[%c0, %c0_0] : memref<8x256xf32, #tpu.memory_space<vmem>>, vector<8x256xf32>
    %c0_1 = arith.constant 0 : index
    %c0_2 = arith.constant 0 : index
    %1 = vector.load %arg2[%c0_1, %c0_2] : memref<8x256xf32, #tpu.memory_space<vmem>>, vector<8x256xf32>
    tpu.vector_store %arg2[%c0_1, %c0_2], %0 {strides = array<i32>} : memref<8x256xf32, #tpu.memory_space<vmem>>, vector<8x256xf32>,
    return
  }
  func.func @transform_0(%arg0: i32) -> (i32, i32) {
    %c0_i32 = arith.constant 0 : i32
    %c0_i32_0 = arith.constant 0 : i32
    return %arg0, %c0_i32 : i32, i32
  }
  func.func @transform_1(%arg0: i32) -> (i32, i32) {
    %c0_i32 = arith.constant 0 : i32
    %c0_i32_0 = arith.constant 0 : i32
    return %arg0, %c0_i32 : i32, i32
  }
}

</mosaic_0001>

<bundles_post_ra>
// kernel: tpu_custom_call.1
= control target key start
LH: loop header
LB: loop body
LE: loop exit
PB: predicated region body
PF: predicated region fallthrough
CT: control target
= control target key end

     0   :  { %6 = vsyncpa [#allocation3], 0  ;;  %s116_s0 = inlined_call_operand.hbm [shape: f32[8,256], index: 0, kind: input, shape index: {}]   ;;  %s117_s1 = inlined_call_operand.hbm [shape: f32[8,256], index: 1, kind: output, shape index: {}]  }
   0x1   :  { %7 = vsyncpa [#allocation4], 0  ;;  %s13_s8 = sshll.u32 %s116_s0, 4  ;;  %s98_s9 = smov [#allocation2]   ;;  %s14_s8 = int_to_ptr.hbm [resolvable:$true] %s13_s8 }
   0x2   :  { %s15_s10 = sshll.u32 %s98_s9, 4  ;;  %s16_s10 = int_to_ptr.vmem [resolvable:$true] %s15_s10 }
   0x3   :  { %18 = dma.hbm_to_vmem [thread:$0]  %s14_s8, 256, %s16_s10, [#allocation3]  }
   0x4   :  { %94 = dma.done.wait [#allocation3], 256  }
   0x5   :  { %95 = vsyncadd [#allocation3], 4294967040  ;;  %s99_s11 = smov [#allocation5]   ;;  %s34_s15 = sshll.u32 %s117_s1, 4  ;;  %v23_v0 = vld [vmem:[#allocation2] sm:$0xff]  ;;  %v24_v1 = vld [vmem:[#allocation2 + $0x8] sm:$0xff]  ;;  %s35_s15 = int_to_ptr.hbm [resolvable:$true] %s34_s15 }
   0x6   :  { %s32_s12 = sshll.u32 %s99_s11, 4  ;;  %25 = vst [vmem:[#allocation5] sm:$0xff] %v23_v0  ;;  %s33_s12 = int_to_ptr.vmem [resolvable:$true] %s32_s12 }
   0x7   :  { %26 = vst [vmem:[#allocation5 + $0x8] sm:$0xff] %v24_v1 }
   0x8   :  { %37 = dma.vmem_to_hbm [thread:$0]  %s33_s12, 256, %s35_s15, [#allocation4]  }
   0x9   :  { %96 = dma.done.wait [#allocation4], 256  }
   0xa   :  { %97 = vsyncadd [#allocation4], 4294967040 }
   0xb   :  { %42 = vsyncpa [#allocation3], 1 }
   0xc   :  { %43 = vsyncpa [#allocation4], 1 }

</bundles_post_ra>
